<compile_context>
chip_gen: v5e
topology: v5e:2x2
jax: 0.10.0
libtpu: 0.0.40
codegen_flags: <defaults>
</compile_context>

<pallas_src>
import functools

import jax
import jax.numpy as jnp
from jax.experimental import pallas as pl
from jax.experimental.pallas import tpu as pltpu


def _round_up(x, m):
    return (x + m - 1) // m * m


def _time_embedding_kernel(tq_ref, tk_ref, table_ref, out_ref, *, clip):
    # tq_ref:    (TQ, 1, 1)   int32  query timestamps for this row tile
    # tk_ref:    (1, S8, 1)   int32  key timestamps (key axis padded to a multiple of 8)
    # table_ref: (Vp, H)      f32    embedding table (zero rows past `clip` are never hit)
    # out_ref:   (TQ*S8, H)   f32    row (q*S8 + k) holds the embedding of clamp(|t_q - t_k|)
    TQ = tq_ref.shape[0]
    S8 = tk_ref.shape[1]
    Vp = table_ref.shape[0]

    # Pairwise |t_q - t_k| clamped to the table range, computed on the narrow
    # (TQ, S8, 1) operands -- no H- or V-expansion of the VPU work.
    diff = jnp.minimum(jnp.abs(tq_ref[...] - tk_ref[...]), clip)   # (TQ, S8, 1) int32

    # One-hot gather on the MXU: onehot[q, k, v] = (diff[q, k] == v).  Exactly
    # one 1.0 per row, so the matmul reproduces the selected table row exactly.
    iota = jax.lax.broadcasted_iota(jnp.int32, (TQ, S8, Vp), 2)
    onehot = (diff == iota).astype(jnp.float32)                    # (TQ, S8, Vp)
    # Collapse (q, k) onto the sublane axis.  S8 % 8 == 0, so this shape-cast is
    # a pure relabeling of the existing vreg layout (minor dim Vp untouched).
    onehot = onehot.reshape(TQ * S8, Vp)

    emb = jnp.dot(
        onehot,
        table_ref[...],
        preferred_element_type=jnp.float32,
        precision=jax.lax.Precision.HIGHEST,
    )                                                              # (TQ*S8, H)
    out_ref[...] = emb.astype(out_ref.dtype)


def time_embedding(timestamps, table, *, q_block=None):
    """timestamps: [B, S] int, table: [clip+1, H] float -> [B, S, S, H]."""
    B, S = timestamps.shape
    V, H = table.shape
    clip = V - 1
    LANE = 128

    # Rebase timestamps in their original (possibly wider) dtype before
    # narrowing to int32 so large epoch-style values cannot wrap in the
    # pairwise difference (rebasing does not change any pairwise diff).
    t = jnp.asarray(timestamps)
    if t.dtype != jnp.int32:
        t = t - jnp.min(t, axis=1, keepdims=True)
        t = t.astype(jnp.int32)

    # Key axis padded to a multiple of 8 so the (q, k) -> sublane collapse in
    # the kernel is layout-preserving.  Padded key columns are sliced off at the
    # end (a copy only in the rare S % 8 != 0 case).
    S8 = max(8, _round_up(S, 8))
    t_k = t if S8 == S else jnp.pad(t, ((0, 0), (0, S8 - S)))
    t_q = t[:, :, None, None]        # (B, S, 1, 1)
    t_k = t_k[:, None, :, None]      # (B, 1, S8, 1)

    # Table rows padded to a multiple of 8 sublanes; the padded zero rows are
    # never selected because indices are clamped to `clip` in-kernel.
    Vp = _round_up(V, 8)
    table_p = table if Vp == V else jnp.pad(table, ((0, Vp - V), (0, 0)))

    # ---- VMEM-aware row-tile selection -------------------------------------
    # Generation-aware scoped-VMEM limit (v7x: 64 MiB physical, v5e/v6e: 128 MiB).
    try:
        vmem_cap = int(pltpu.get_tpu_info().vmem_capacity_bytes)
    except Exception:
        vmem_cap = 64 << 20
    vmem_limit = max(32 << 20, min(int(vmem_cap * 0.6), 96 << 20))
    budget = vmem_limit // 2         # headroom for Mosaic internal scratch

    h_pad = _round_up(H, LANE)       # out / matmul-result blocks are lane-padded
    v_lane = _round_up(Vp, LANE)     # one-hot operand is lane-padded
    # Bytes per query row per grid step:
    #   2x out block (double-buffered) + staged matmul result + one-hot operand
    #   + narrow lane-1 intermediates + the (q_block,1,1) query column buffers.
    per_row = S8 * 4 * (3 * h_pad + v_lane + 2 * LANE) + 2 * 8 * LANE * 4

    if q_block is None:
        q_block = max(1, budget // per_row)
    q_block = int(q_block)
    if q_block >= S:
        q_block = S                              # one row tile per batch element
    else:
        q_block = max(8, (q_block // 8) * 8)     # interior blocks: multiple of 8
    # v7x has 2 TensorCores per chip: make sure the grid has >= 2 programs.
    if B == 1 and q_block >= S and S >= 16:
        q_block = max(8, ((S // 2) // 8) * 8)

    n_q = pl.cdiv(S, q_block)

    out = pl.pallas_call(
        functools.partial(_time_embedding_kernel, clip=int(clip)),
        out_shape=jax.ShapeDtypeStruct((B, S * S8, H), table.dtype),
        grid_spec=pltpu.PrefetchScalarGridSpec(
            num_scalar_prefetch=0,
            grid=(B, n_q),
            in_specs=[
                pl.BlockSpec((None, q_block, 1, 1), lambda b, qi: (b, qi, 0, 0)),
                pl.BlockSpec((None, 1, S8, 1), lambda b, qi: (b, 0, 0, 0)),
                pl.BlockSpec((Vp, H), lambda b, qi: (0, 0)),
            ],
            out_specs=pl.BlockSpec((None, q_block * S8, H),
                                   lambda b, qi: (b, qi, 0)),
        ),
        compiler_params=pltpu.CompilerParams(
            # Both grid axes are independent -> shard across TensorCores.
            dimension_semantics=("parallel", "parallel"),
            vmem_limit_bytes=int(vmem_limit),
        ),
    )(t_q, t_k, table_p)

    # Free row-major reinterpretation; the key slice only copies when S % 8 != 0.
    out = out.reshape(B, S, S8, H)
    if S8 != S:
        out = out[:, :, :S, :]
    return out


if __name__ == "__main__":
    # args.tisas_max_time_intervals, args.hidden_units
    clip = 16
    hidden = 32
    B, S = 2, 8

    key = jax.random.PRNGKey(0)
    k_tab, k_ts = jax.random.split(key)

    # Deterministic "trained" embedding table (synthetic init, no checkpoint).
    # Values are rounded to bf16-representable f32 so the correctness check is
    # exact regardless of how the MXU splits the f32 matmul passes.
    table = jax.random.normal(k_tab, (clip + 1, hidden), dtype=jnp.float32)
    table = table.astype(jnp.bfloat16).astype(jnp.float32)
    # Integer timestamps; diffs exceed `clip` sometimes, exercising the clamp.
    timestamps = jax.random.randint(k_ts, (B, S), 0, 100, dtype=jnp.int32)

    out = time_embedding(timestamps, table)
    out = jax.block_until_ready(out)

    # Reference: the PyTorch forward written in plain JAX.
    td = jnp.abs(timestamps[:, :, None] - timestamps[:, None, :])
    td = jnp.minimum(td, clip)
    ref = jnp.take(table, td, axis=0)                    # (B, S, S, hidden)

    assert out.shape == (B, S, S, hidden)
    assert jnp.allclose(out, ref, atol=1e-6), "mismatch vs reference lookup"

    print("KERNEL_OK")
</pallas_src>

<mosaic_0001>
module attributes {stable_mosaic.version = 11 : i64} {
  func.func @_time_embedding_kernel(%arg0: i32, %arg1: i32, %arg2: memref<1x8x1x1xi32, #tpu.memory_space<vmem>>, %arg3: memref<1x1x8x1xi32, #tpu.memory_space<vmem>>, %arg4: memref<24x32xf32, #tpu.memory_space<vmem>>, %arg5: memref<1x64x32xf32, #tpu.memory_space<vmem>>) attributes {dimension_semantics = [#tpu.dimension_semantics<parallel>, #tpu.dimension_semantics<parallel>], iteration_bounds = array<i64: 2, 1>, scalar_prefetch = 0 : i64, scratch_operands = 0 : i64, tpu.core_type = #tpu.core_type<tc>, window_params = [{transform_indices = @transform_0, window_bounds = array<i64: 1, 8, 1, 1>}, {transform_indices = @transform_1, window_bounds = array<i64: 1, 1, 8, 1>}, {pipeline_mode = #tpu.pipeline_mode<synchronous>, transform_indices = @transform_2, window_bounds = array<i64: 24, 32>}, {transform_indices = @transform_3, window_bounds = array<i64: 1, 64, 32>}]} {
    %c0 = arith.constant 0 : index
    %c0_0 = arith.constant 0 : index
    %c0_1 = arith.constant 0 : index
    %c0_2 = arith.constant 0 : index
    %0 = vector.load %arg2[%c0, %c0_0, %c0_1, %c0_2] : memref<1x8x1x1xi32, #tpu.memory_space<vmem>>, vector<1x8x1x1xi32>
    %1 = vector.shape_cast %0 : vector<1x8x1x1xi32> to vector<8x1x1xi32>
    %c0_3 = arith.constant 0 : index
    %c0_4 = arith.constant 0 : index
    %c0_5 = arith.constant 0 : index
    %c0_6 = arith.constant 0 : index
    %2 = vector.load %arg3[%c0_3, %c0_4, %c0_5, %c0_6] : memref<1x1x8x1xi32, #tpu.memory_space<vmem>>, vector<1x1x8x1xi32>
    %3 = vector.shape_cast %2 : vector<1x1x8x1xi32> to vector<1x8x1xi32>
    %4 = vector.broadcast %1 : vector<8x1x1xi32> to vector<8x8x1xi32>
    %5 = vector.broadcast %3 : vector<1x8x1xi32> to vector<8x8x1xi32>
    %6 = arith.subi %4, %5 : vector<8x8x1xi32>
    %7 = math.absi %6 : vector<8x8x1xi32>
    %c16_i32 = arith.constant 16 : i32
    %8 = vector.broadcast %c16_i32 : i32 to vector<8x8x1xi32>
    %9 = arith.minsi %7, %8 : vector<8x8x1xi32>
    %10 = tpu.iota {dimensions = array<i32: 2>} : vector<8x8x24xi32>
    %11 = vector.broadcast %9 : vector<8x8x1xi32> to vector<8x8x24xi32>
    %12 = arith.cmpi eq, %11, %10 : vector<8x8x24xi32>
    %13 = arith.extui %12 : vector<8x8x24xi1> to vector<8x8x24xi32>
    %14 = arith.sitofp %13 : vector<8x8x24xi32> to vector<8x8x24xf32>
    %15 = vector.shape_cast %14 : vector<8x8x24xf32> to vector<64x24xf32>
    %c0_7 = arith.constant 0 : index
    %c0_8 = arith.constant 0 : index
    %16 = vector.load %arg4[%c0_7, %c0_8] : memref<24x32xf32, #tpu.memory_space<vmem>>, vector<24x32xf32>
    %cst = arith.constant dense<0.000000e+00> : vector<64x32xf32>
    %17 = tpu.matmul %15, %16, %cst {dimension_numbers = #tpu.dot_dimension_numbers<[1], [0], [0], [1], [0, 0, 1, 1], [], []>, precision = #tpu.contract_precision<fp32>} : vector<64x24xf32>, vector<24x32xf32>, vector<64x32xf32> -> vector<64x32xf32>
    %c0_9 = arith.constant 0 : index
    %c0_10 = arith.constant 0 : index
    %c0_11 = arith.constant 0 : index
    %18 = vector.load %arg5[%c0_9, %c0_10, %c0_11] : memref<1x64x32xf32, #tpu.memory_space<vmem>>, vector<1x64x32xf32>
    %19 = vector.shape_cast %18 : vector<1x64x32xf32> to vector<64x32xf32>
    %20 = vector.shape_cast %17 : vector<64x32xf32> to vector<1x64x32xf32>
    tpu.vector_store %arg5[%c0_9, %c0_10, %c0_11], %20 {strides = array<i32>} : memref<1x64x32xf32, #tpu.memory_space<vmem>>, vector<1x64x32xf32>,
    return
  }
  func.func @transform_0(%arg0: i32, %arg1: i32) -> (i32, i32, i32, i32) {
    %c0_i32 = arith.constant 0 : i32
    %c0_i32_0 = arith.constant 0 : i32
    %c0_i32_1 = arith.constant 0 : i32
    return %arg0, %arg1, %c0_i32, %c0_i32_0 : i32, i32, i32, i32
  }
  func.func @transform_1(%arg0: i32, %arg1: i32) -> (i32, i32, i32, i32) {
    %c0_i32 = arith.constant 0 : i32
    %c0_i32_0 = arith.constant 0 : i32
    %c0_i32_1 = arith.constant 0 : i32
    %c0_i32_2 = arith.constant 0 : i32
    return %arg0, %c0_i32, %c0_i32_0, %c0_i32_1 : i32, i32, i32, i32
  }
  func.func @transform_2(%arg0: i32, %arg1: i32) -> (i32, i32) {
    %c0_i32 = arith.constant 0 : i32
    %c0_i32_0 = arith.constant 0 : i32
    %c0_i32_1 = arith.constant 0 : i32
    return %c0_i32, %c0_i32_0 : i32, i32
  }
  func.func @transform_3(%arg0: i32, %arg1: i32) -> (i32, i32, i32) {
    %c0_i32 = arith.constant 0 : i32
    %c0_i32_0 = arith.constant 0 : i32
    return %arg0, %arg1, %c0_i32 : i32, i32, i32
  }
}

</mosaic_0001>

<bundles_post_ra>
// kernel: tpu_custom_call.1
= control target key start
LH: loop header
LB: loop body
LE: loop exit
PB: predicated region body
PF: predicated region fallthrough
CT: control target
= control target key end

     0   :  { %s994_s12 = smov 0   ;;  %s996_s13 = smov 0   ;;  %s1216_s0 = inlined_call_operand.vmem [shape: s32[2,8,1,1], index: 0, kind: input, shape index: {}]   ;;  %s1217_s1 = inlined_call_operand.vmem [shape: s32[2,1,8,1], index: 1, kind: input, shape index: {}]   ;;  %s1218_s2 = inlined_call_operand.vmem [shape: f32[24,32], index: 2, kind: input, shape index: {}]   ;;  %s1219_s3 = inlined_call_operand.vmem [shape: f32[2,64,32], index: 3, kind: output, shape index: {}]  }
   0x1   :  { %s998_s14 = smov 0  }
   0x2 LB: > { %s25_s15 = sadd.s32 1, %s966_s13  ;;  %p865_p0 = scmp.ge.s32.totalorder %s970_s14, 1  ;;  %s970_s14 = sphi %s998_s14, %s13_s14   ;;  %s966_s13 = sphi %s996_s13, %s1221_s13   ;;  %s962_s12 = sphi %s994_s12, %s1220_s12  }
   0x3   : > { %p27_p1 = scmp.ge.s32.totalorder %s25_s15, 2  ;;  %p166_p2 = scmp.lt.s32.totalorder %s970_s14, 3 }
   0x5   : > { %s1223_s15 = smov (%p27_p1, %s25_s15), 0  ;;  %p167_p3 = pnand %p865_p0, %p166_p2 }
   0x6   : > { %p202_p4 = scmp.lt.s32.totalorder (!%p167_p3), %s962_s12, 1 }
   0x7   : > { %170 = sbr.rel (%p167_p3) target bundleno = 379 (0x17b), region = 32 }
   0xc   : > { %v341_v0 = vld [vmem:[%s1218_s2 + $0x10] sm:$0xff]  ;;  %v340_v1 = vld [vmem:[%s1218_s2 + $0x8] sm:$0xff]  ;;  %v972_v2 = vmov 0   ;;  %s1225_s12 = smov (!%p202_p4, %s962_s12), 1  ;;  %v339_v54 = vld [vmem:[%s1218_s2] sm:$0xff]  ;;  %v289_v60 = vlaneseq  ;;  %v973_v63 = vmov 0.0  }
   0xd   : > { %938 = vset.pattern.permute.xlu1 %v972_v2  ;;  %937 = vset.pattern.permute.xlu0 %v972_v2  ;;  %v1018_v3 = vand.u32 4294901760, %v341_v0  ;;  %v1020_v4 = vand.u32 4294901760, %v340_v1  ;;  %s866_s20 = sshll.u32 %s1225_s12, 3  ;;  %v384_v55 = vand.u32 4294901760, %v339_v54  ;;  %s904_s29 = sshll.u32 %s1225_s12, 6 }
   0xe   : > { %939 = vset.pattern.permute.xlu2 %v972_v2  ;;  %s1036_s23 = scalar_lea.vmem %s1216_s0, %s866_s20  ;;  %s213_s26 = scalar_lea.vmem %s1217_s1, %s866_s20  ;;  %v290_v61 = vand.u32 127, %v289_v60 }
   0xf   : > { %v1025_v5 = vsub.f32 %v341_v0, %v1018_v3  ;;  %v1028_v6 = vsub.f32 %v340_v1, %v1020_v4  ;;  %381 = vmatpush.msra.mxu0 %v1018_v3  ;;  %905 = vmatpush.msra.mxu2 %v1018_v3  ;;  %v232_v8 = vld [vmem:[%s213_s26] sm:$0xff]  ;;  %v477_v56 = vsub.f32 %v339_v54, %v384_v55  ;;  %s1184_s5 = scalar_lea.vmem %s1219_s3, %s904_s29 }
  0x10   : > { %v940_v9 = vld [vmem:[%s1036_s23 + $0x4] ss:$0 sm:$0xff]  ;;  %v941_v11 = vld [vmem:[%s1036_s23] ss:$0 sm:$0xff]  ;;  %v942_v13 = vld [vmem:[%s1036_s23 + $0x5] ss:$0 sm:$0xff] }
  0x11   : > { %v466_v7 = vand.u32 4294901760, %v1025_v5  ;;  %383 = vmatpush.msra.mxu0 %v1020_v4  ;;  %906 = vmatpush.msra.mxu2 %v1020_v4  ;;  %v472_v10 = vand.u32 4294901760, %v1028_v6  ;;  %v245_v12 = vsub.s32 %v940_v9, %v232_v8  ;;  %v943_v14 = vld [vmem:[%s1036_s23 + $0x6] ss:$0 sm:$0xff]  ;;  %v241_v15 = vsub.s32 %v941_v11, %v232_v8  ;;  %v944_v16 = vld [vmem:[%s1036_s23 + $0x2] ss:$0 sm:$0xff] }
  0x12   : > { %v246_v18 = vsub.s32 %v942_v13, %v232_v8  ;;  %v247_v19 = vsub.s32 %v943_v14, %v232_v8  ;;  %v945_v21 = vld [vmem:[%s1036_s23 + $0x3] ss:$0 sm:$0xff]  ;;  %v946_v24 = vld [vmem:[%s1036_s23 + $0x1] ss:$0 sm:$0xff]  ;;  %v243_v27 = vsub.s32 %v944_v16, %v232_v8  ;;  %v947_v30 = vld [vmem:[%s1036_s23 + $0x7] ss:$0 sm:$0xff] }
  0x13   : > { %vm261_vm0 = vcmp.lt.s32.totalorder %v245_v12, 0  ;;  %v262_v17 = vsub.s32 0, %v245_v12  ;;  %vm249_vm1 = vcmp.lt.s32.totalorder %v241_v15, 0  ;;  %v250_v20 = vsub.s32 0, %v241_v15  ;;  %385 = vmatpush.msra.mxu0 %v384_v55  ;;  %907 = vmatpush.msra.mxu2 %v384_v55 }
  0x14   : > { %vm264_vm2 = vcmp.lt.s32.totalorder %v246_v18, 0  ;;  %v265_v23 = vsub.s32 0, %v246_v18  ;;  %vm267_vm3 = vcmp.lt.s32.totalorder %v247_v19, 0  ;;  %v268_v26 = vsub.s32 0, %v247_v19 }
  0x15   : > { %v263_v22 = vsel %vm261_vm0, %v262_v17, %v245_v12  ;;  %v251_v25 = vsel %vm249_vm1, %v250_v20, %v241_v15  ;;  %v244_v33 = vsub.s32 %v945_v21, %v232_v8  ;;  %v467_v34 = vsub.f32 %v1025_v5, %v466_v7  ;;  %530 = vmatpush.msrb.mxu2 %v1025_v5 }
  0x16   : > { %vm281_vm4 = vcmp.lt.s32.totalorder %v263_v22, 16  ;;  %vm273_vm5 = vcmp.lt.s32.totalorder %v251_v25, 16  ;;  %v266_v29 = vsel %vm264_vm2, %v265_v23, %v246_v18  ;;  %v269_v32 = vsel %vm267_vm3, %v268_v26, %v247_v19  ;;  %662 = vmatpush.msrb.mxu0 %v466_v7 }
  0x17   : > { %v282_v28 = vsel %vm281_vm4, %v263_v22, 16  ;;  %v274_v31 = vsel %vm273_vm5, %v251_v25, 16  ;;  %vm283_vm6 = vcmp.lt.s32.totalorder %v266_v29, 16  ;;  %v242_v35 = vsub.s32 %v946_v24, %v232_v8  ;;  %533 = vmatpush.msrb.mxu2 %v1028_v6 }
  0x18   : > { %304 = vperm.xlu0 %937, %v282_v28   ;;  %292 = vperm.xlu1 %938, %v274_v31   ;;  %v473_v36 = vsub.f32 %v1028_v6, %v472_v10  ;;  %vm255_vm7 = vcmp.lt.s32.totalorder %v243_v27, 0  ;;  %v256_v37 = vsub.s32 0, %v243_v27  ;;  %vm285_vm8 = vcmp.lt.s32.totalorder %v269_v32, 16 }
  0x19   : > { %vm252_vm9 = vcmp.lt.s32.totalorder %v242_v35, 0  ;;  %v253_v38 = vsub.s32 0, %v242_v35  ;;  %v248_v39 = vsub.s32 %v947_v30, %v232_v8  ;;  %v284_v40 = vsel %vm283_vm6, %v266_v29, 16  ;;  %666 = vmatpush.msrb.mxu0 %v472_v10  ;;  %536 = vmatpush.msrb.mxu2 %v477_v56 }
  0x1a   : > { %vm258_vm10 = vcmp.lt.s32.totalorder %v244_v33, 0  ;;  %v259_v41 = vsub.s32 0, %v244_v33  ;;  %v468_v42 = vand.u32 4294901760, %v467_v34  ;;  %v474_v45 = vand.u32 4294901760, %v473_v36 }
  0x1b   : > { %v254_v43 = vsel %vm252_vm9, %v253_v38, %v242_v35  ;;  %vm270_vm11 = vcmp.lt.s32.totalorder %v248_v39, 0  ;;  %v271_v44 = vsub.s32 0, %v248_v39  ;;  %v286_v46 = vsel %vm285_vm8, %v269_v32, 16 }
  0x1c   : > { %vm275_vm12 = vcmp.lt.s32.totalorder %v254_v43, 16  ;;  %469 = vmatpush.msra.mxu1 %v468_v42  ;;  %908 = vmatpush.msra.mxu3 %v468_v42  ;;  %v257_v47 = vsel %vm255_vm7, %v256_v37, %v243_v27  ;;  %v260_v50 = vsel %vm258_vm10, %v259_v41, %v244_v33  ;;  %v478_v57 = vand.u32 4294901760, %v477_v56 }
  0x1d   : > { %v276_v48 = vsel %vm275_vm12, %v254_v43, 16  ;;  %v272_v49 = vsel %vm270_vm11, %v271_v44, %v248_v39  ;;  %vm277_vm13 = vcmp.lt.s32.totalorder %v257_v47, 16  ;;  %vm279_vm15 = vcmp.lt.s32.totalorder %v260_v50, 16 }
  0x1e   : > { %295 = vperm.xlu2 %939, %v276_v48   ;;  %475 = vmatpush.msra.mxu1 %v474_v45  ;;  %vm287_vm14 = vcmp.lt.s32.totalorder %v272_v49, 16  ;;  %v278_v51 = vsel %vm277_vm13, %v257_v47, 16  ;;  %v280_v53 = vsel %vm279_vm15, %v260_v50, 16  ;;  %v479_v58 = vsub.f32 %v477_v56, %v478_v57 }
  0x1f   : > { %909 = vmatpush.msra.mxu3 %v474_v45  ;;  %v288_v52 = vsel %vm287_vm14, %v272_v49, 16  ;;  %670 = vmatpush.msrb.mxu0 %v478_v57  ;;  %vm342_vm1 = vcmask 195584   ;;  %vm756_vm9 = vcmask 261120  }
  0x20   : > { %307 = vperm.xlu0 %937, %v284_v40   ;;  %310 = vperm.xlu1 %938, %v286_v46   ;;  %v480_v59 = vand.u32 4294901760, %v479_v58 }
  0x22   : > { %481 = vmatpush.msra.mxu1 %v480_v59  ;;  %910 = vmatpush.msra.mxu3 %v480_v59 }
  0x24   : > { %592 = vmatpush.msrb.mxu3 %v1018_v3  ;;  %718 = vmatpush.msrb.mxu1 %v1018_v3 }
  0x26   : > { %313 = vperm.xlu2 %939, %v288_v52   ;;  %594 = vmatpush.msrb.mxu3 %v1020_v4 }
  0x27   : > { %720 = vmatpush.msrb.mxu1 %v1020_v4 }
  0x28   : > { %298 = vperm.xlu0 %937, %v278_v51   ;;  %301 = vperm.xlu1 %938, %v280_v53  }
  0x29   : > { %596 = vmatpush.msrb.mxu3 %v384_v55  ;;  %722 = vmatpush.msrb.mxu1 %v384_v55 }
  0x78   : > { %v296_v62 = vpop.permute.xlu2 %295 }
  0x79   : > { %vm316_vm0 = vcmp.eq.s32.totalorder %v296_v62, %v290_v61 }
  0x7a   : > { %v1073_v0 = vsel %vm316_vm0, 1.0, %v973_v63 }
  0x7b   : > { %v347_v3 = vsel %vm342_vm1, %v1073_v0, 0 }
  0x7c   : > { %v1093_v10 = vsub.f32 %v347_v3, %v347_v3 }
  0x7e   : > { %v396_v17 = vand.u32 4294901760, %v1093_v10 }
  0x80   : > { %v314_v20 = vpop.permute.xlu2 %313  ;;  %v397_v26 = vsub.f32 %v1093_v10, %v396_v17 }
  0x81   : > { %vm322_vm6 = vcmp.eq.s32.totalorder %v314_v20, %v290_v61 }
  0x82   : > { %v1120_v29 = vsel %vm322_vm6, 1.0, %v973_v63  ;;  %v398_v33 = vand.u32 4294901760, %v397_v26 }
  0x83   : > { %v365_v37 = vsel %vm342_vm1, %v1120_v29, 0 }
  0x84   : > { %v443_v42 = vsub.f32 %v365_v37, %v365_v37 }
  0x86   : > { %v444_v49 = vand.u32 4294901760, %v443_v42 }
  0x88   : > { %v445_v51 = vsub.f32 %v443_v42, %v444_v49 }
  0x8a   : > { %v305_v1 = vpop.permute.xlu0 %304  ;;  %v293_v2 = vpop.permute.xlu1 %292  ;;  %v446_v53 = vand.u32 4294901760, %v445_v51 }
  0x8b   : > { %vm319_vm2 = vcmp.eq.s32.totalorder %v305_v1, %v290_v61  ;;  %vm315_vm3 = vcmp.eq.s32.totalorder %v293_v2, %v290_v61 }
  0x8c   : > { %v1075_v5 = vsel %vm319_vm2, 1.0, %v973_v63  ;;  %v1081_v6 = vsel %vm315_vm3, 1.0, %v973_v63 }
  0x8d   : > { %v356_v4 = vsel %vm342_vm1, %v1075_v5, 0  ;;  %882 = vmatmul.msk.f32.vlgmr.msra.gmra.mxu3 %vm342_vm1, %v1075_v5  ;;  %v344_v8 = vsel %vm342_vm1, %v1081_v6, 0  ;;  %878 = vmatmul.msk.f32.vlgmr.msra.gmra.mxu1 %vm342_vm1, %v1081_v6 }
  0x8e   : > { %v1085_v7 = vsub.f32 %v356_v4, %v356_v4  ;;  %v1091_v9 = vsub.f32 %v344_v8, %v344_v8 }
  0x90   : > { %v420_v11 = vand.u32 4294901760, %v1085_v7  ;;  %v388_v12 = vand.u32 4294901760, %v1091_v9 }
  0x92   : > { %v308_v13 = vpop.permute.xlu0 %307  ;;  %v421_v14 = vsub.f32 %v1085_v7, %v420_v11  ;;  %v311_v15 = vpop.permute.xlu1 %310  ;;  %v389_v16 = vsub.f32 %v1091_v9, %v388_v12 }
  0x93   : > { %vm320_vm4 = vcmp.eq.s32.totalorder %v308_v13, %v290_v61  ;;  %vm321_vm5 = vcmp.eq.s32.totalorder %v311_v15, %v290_v61 }
  0x94   : > { %v1102_v18 = vsel %vm320_vm4, 1.0, %v973_v63  ;;  %v422_v19 = vand.u32 4294901760, %v421_v14  ;;  %v1106_v22 = vsel %vm321_vm5, 1.0, %v973_v63  ;;  %v390_v23 = vand.u32 4294901760, %v389_v16 }
  0x95   : > { %v359_v21 = vsel %vm342_vm1, %v1102_v18, 0  ;;  %883 = vmatmul.msk.f32.gmra.mxu3 %vm342_vm1, %v1102_v18  ;;  %v362_v25 = vsel %vm342_vm1, %v1106_v22, 0  ;;  %879 = vmatmul.msk.f32.gmra.mxu1 %vm342_vm1, %v1073_v0 }
  0x96   : > { %v1110_v24 = vsub.f32 %v359_v21, %v359_v21  ;;  %423 = vmatmul.f32.vlgmr.msra.gmra.mxu2 %v422_v19  ;;  %391 = vmatmul.f32.vlgmr.msra.gmra.mxu0 %v390_v23  ;;  %v1117_v27 = vsub.f32 %v362_v25, %v362_v25 }
  0x98   : > { %v428_v28 = vand.u32 4294901760, %v1110_v24  ;;  %v436_v36 = vand.u32 4294901760, %v1117_v27 }
  0x9a   : > { %v299_v30 = vpop.permute.xlu0 %298  ;;  %v429_v31 = vsub.f32 %v1110_v24, %v428_v28  ;;  %v302_v32 = vpop.permute.xlu1 %301  ;;  %v437_v44 = vsub.f32 %v1117_v27, %v436_v36 }
  0x9b   : > { %vm317_vm7 = vcmp.eq.s32.totalorder %v299_v30, %v290_v61  ;;  %vm318_vm8 = vcmp.eq.s32.totalorder %v302_v32, %v290_v61 }
  0x9c   : > { %v872_v34 = vsel %vm317_vm7, 1.0, %v973_v63  ;;  %v430_v35 = vand.u32 4294901760, %v429_v31  ;;  %v873_v39 = vsel %vm318_vm8, 1.0, %v973_v63  ;;  %v438_v48 = vand.u32 4294901760, %v437_v44 }
  0x9d   : > { %v350_v38 = vsel %vm342_vm1, %v872_v34, 0  ;;  %884 = vmatmul.msk.f32.gmra.mxu3 %vm342_vm1, %v1106_v22  ;;  %v353_v41 = vsel %vm342_vm1, %v873_v39, 0  ;;  %880 = vmatmul.msk.f32.gmra.mxu1 %vm342_vm1, %v872_v34 }
  0x9e   : > { %v403_v40 = vsub.f32 %v350_v38, %v350_v38  ;;  %431 = vmatmul.f32.gmra.mxu2 %v430_v35  ;;  %399 = vmatmul.f32.gmra.mxu0 %v398_v33  ;;  %v411_v45 = vsub.f32 %v353_v41, %v353_v41 }
  0xa0   : > { %v404_v43 = vand.u32 4294901760, %v403_v40  ;;  %v412_v50 = vand.u32 4294901760, %v411_v45 }
  0xa2   : > { %v405_v46 = vsub.f32 %v403_v40, %v404_v43  ;;  %v413_v52 = vsub.f32 %v411_v45, %v412_v50 }
  0xa4   : > { %v406_v47 = vand.u32 4294901760, %v405_v46  ;;  %v414_v54 = vand.u32 4294901760, %v413_v52 }
  0xa5   : > { %885 = vmatmul.msk.f32.gmra.mxu3 %vm342_vm1, %v1120_v29  ;;  %881 = vmatmul.msk.f32.gmra.mxu1 %vm342_vm1, %v873_v39 }
  0xa6   : > { %439 = vmatmul.f32.gmra.mxu2 %v438_v48  ;;  %407 = vmatmul.f32.gmra.mxu0 %v406_v47 }
  0xad   : > { %600 = vmatmul.f32.vlgmr.msrb.gmra.mxu3 %v388_v12  ;;  %894 = vmatmul.msk.f32.vlgmr.msrb.gmra.mxu1 %vm342_vm1, %v1081_v6 }
  0xae   : > { %447 = vmatmul.f32.gmra.mxu2 %v446_v53  ;;  %415 = vmatmul.f32.gmra.mxu0 %v414_v54 }
  0xb5   : > { %606 = vmatmul.f32.gmra.mxu3 %v396_v17  ;;  %895 = vmatmul.msk.f32.gmra.mxu1 %vm342_vm1, %v1073_v0 }
  0xb6   : > { %539 = vmatmul.f32.vlgmr.msrb.gmra.mxu2 %v1091_v9  ;;  %886 = vmatmul.msk.f32.vlgmr.msrb.gmra.mxu0 %vm342_vm1, %v1081_v6 }
  0xbd   : > { %612 = vmatmul.f32.gmra.mxu3 %v404_v43  ;;  %896 = vmatmul.msk.f32.gmra.mxu1 %vm342_vm1, %v872_v34 }
  0xbe   : > { %544 = vmatmul.f32.gmra.mxu2 %v1093_v10  ;;  %887 = vmatmul.msk.f32.gmra.mxu0 %vm342_vm1, %v1073_v0 }
  0xc5   : > { %618 = vmatmul.f32.gmra.mxu3 %v412_v50  ;;  %897 = vmatmul.msk.f32.gmra.mxu1 %vm342_vm1, %v873_v39 }
  0xc6   : > { %549 = vmatmul.f32.gmra.mxu2 %v403_v40  ;;  %888 = vmatmul.msk.f32.gmra.mxu0 %vm342_vm1, %v872_v34 }
  0xcd   : > { %624 = vmatmul.f32.gmra.mxu3 %v420_v11  ;;  %898 = vmatmul.msk.f32.gmra.mxu1 %vm342_vm1, %v1075_v5 }
  0xce   : > { %554 = vmatmul.f32.gmra.mxu2 %v411_v45  ;;  %889 = vmatmul.msk.f32.gmra.mxu0 %vm342_vm1, %v873_v39 }
  0xd5   : > { %630 = vmatmul.f32.gmra.mxu3 %v428_v28  ;;  %899 = vmatmul.msk.f32.gmra.mxu1 %vm342_vm1, %v1102_v18 }
  0xd6   : > { %559 = vmatmul.f32.gmra.mxu2 %v1085_v7  ;;  %890 = vmatmul.msk.f32.gmra.mxu0 %vm342_vm1, %v1075_v5 }
  0xdd   : > { %636 = vmatmul.f32.gmra.mxu3 %v436_v36  ;;  %900 = vmatmul.msk.f32.gmra.mxu1 %vm342_vm1, %v1106_v22 }
  0xde   : > { %564 = vmatmul.f32.gmra.mxu2 %v1110_v24  ;;  %891 = vmatmul.msk.f32.gmra.mxu0 %vm342_vm1, %v1102_v18 }
  0xe5   : > { %642 = vmatmul.f32.gmra.mxu3 %v444_v49  ;;  %901 = vmatmul.msk.f32.gmra.mxu1 %vm342_vm1, %v1120_v29 }
  0xe6   : > { %569 = vmatmul.f32.gmra.mxu2 %v1117_v27  ;;  %892 = vmatmul.msk.f32.gmra.mxu0 %vm342_vm1, %v1106_v22 }
  0xee   : > { %574 = vmatmul.f32.gmra.mxu2 %v443_v42  ;;  %893 = vmatmul.msk.f32.gmra.mxu0 %vm342_vm1, %v1120_v29 }
 0x10a   : > { %v484_v55 = vpop.f32.mrf.mxu1 }
 0x110   : > { %v500_v56 = vpop.f32.mrf.mxu3 }
 0x112   : > { %v488_v57 = vpop.f32.mrf.mxu1 }
 0x113   : > { %v392_v58 = vpop.f32.mrf.mxu0 }
 0x114   : > { %v485_v10 = vadd.f32 %v484_v55, %v392_v58 }
 0x118   : > { %v1170_v59 = vpop.f32.mrf.mxu3 }
 0x119   : > { %v424_v60 = vpop.f32.mrf.mxu2 }
 0x11a   : > { %v492_v62 = vpop.f32.mrf.mxu1  ;;  %v501_v44 = vadd.f32 %v500_v56, %v424_v60 }
 0x11b   : > { %v400_v61 = vpop.f32.mrf.mxu0 }
 0x11c   : > { %v489_v18 = vadd.f32 %v488_v57, %v400_v61 }
 0x120   : > { %v1172_v63 = vpop.f32.mrf.mxu3 }
 0x121   : > { %v432_v0 = vpop.f32.mrf.mxu2 }
 0x122   : > { %v496_v2 = vpop.f32.mrf.mxu1  ;;  %v505_v52 = vadd.f32 %v1170_v59, %v432_v0 }
 0x123   : > { %v408_v1 = vpop.f32.mrf.mxu0 }
 0x124   : > { %v493_v27 = vadd.f32 %v492_v62, %v408_v1 }
 0x128   : > { %v1174_v5 = vpop.f32.mrf.mxu3 }
 0x129   : > { %v1176_v3 = vpop.f32.mrf.mxu2 }
 0x12a   : > { %v725_v7 = vpop.f32.mrf.mxu1  ;;  %v509_v61 = vadd.f32 %v1172_v63, %v1176_v3 }
 0x12b   : > { %v416_v4 = vpop.f32.mrf.mxu0 }
 0x12c   : > { %v497_v36 = vadd.f32 %v496_v2, %v416_v4 }
 0x130   : > { %v601_v6 = vpop.f32.mrf.mxu3 }
 0x131   : > { %v1178_v8 = vpop.f32.mrf.mxu2 }
 0x132   : > { %v729_v14 = vpop.f32.mrf.mxu1 }
 0x133   : > { %v673_v9 = vpop.f32.mrf.mxu0 }
 0x138   : > { %v607_v11 = vpop.f32.mrf.mxu3 }
 0x139   : > { %v540_v12 = vpop.f32.mrf.mxu2 }
 0x13a   : > { %v541_v13 = vadd.f32 %v540_v12, %v485_v10  ;;  %v733_v25 = vpop.f32.mrf.mxu1 }
 0x13b   : > { %v677_v16 = vpop.f32.mrf.mxu0 }
 0x13c   : > { %v602_v15 = vadd.f32 %v601_v6, %v541_v13 }
 0x13e   : > { %v674_v17 = vadd.f32 %v673_v9, %v602_v15  ;;  %v513_v9 = vadd.f32 %v1174_v5, %v1178_v8 }
 0x140   : > { %v726_v19 = vadd.f32 %v725_v7, %v674_v17  ;;  %v613_v20 = vpop.f32.mrf.mxu3 }
 0x141   : > { %v545_v21 = vpop.f32.mrf.mxu2 }
 0x142   : > { %757 = vst.msk [vmem:[%s1184_s5] sm:$0xff] %vm756_vm9, %v726_v19  ;;  %v546_v22 = vadd.f32 %v545_v21, %v489_v18  ;;  %v737_v35 = vpop.f32.mrf.mxu1 }
 0x143   : > { %v681_v24 = vpop.f32.mrf.mxu0 }
 0x144   : > { %v608_v23 = vadd.f32 %v607_v11, %v546_v22 }
 0x146   : > { %v678_v26 = vadd.f32 %v677_v16, %v608_v23 }
 0x148   : > { %v730_v28 = vadd.f32 %v729_v14, %v678_v26  ;;  %v619_v31 = vpop.f32.mrf.mxu3 }
 0x149   : > { %v550_v29 = vpop.f32.mrf.mxu2 }
 0x14a   : > { %758 = vst.msk [vmem:[%s1184_s5 + $0x8] sm:$0xff] %vm756_vm9, %v730_v28  ;;  %v551_v30 = vadd.f32 %v550_v29, %v493_v27  ;;  %v741_v46 = vpop.f32.mrf.mxu1 }
 0x14b   : > { %v685_v33 = vpop.f32.mrf.mxu0 }
 0x14c   : > { %v614_v32 = vadd.f32 %v613_v20, %v551_v30 }
 0x14e   : > { %v682_v34 = vadd.f32 %v681_v24, %v614_v32 }
 0x150   : > { %v734_v37 = vadd.f32 %v733_v25, %v682_v34  ;;  %v625_v41 = vpop.f32.mrf.mxu3 }
 0x151   : > { %v555_v38 = vpop.f32.mrf.mxu2 }
 0x152   : > { %759 = vst.msk [vmem:[%s1184_s5 + $0x10] sm:$0xff] %vm756_vm9, %v734_v37  ;;  %v556_v39 = vadd.f32 %v555_v38, %v497_v36  ;;  %v745_v58 = vpop.f32.mrf.mxu1 }
 0x153   : > { %v689_v43 = vpop.f32.mrf.mxu0 }
 0x154   : > { %v620_v40 = vadd.f32 %v619_v31, %v556_v39 }
 0x156   : > { %v686_v42 = vadd.f32 %v685_v33, %v620_v40 }
 0x158   : > { %v738_v45 = vadd.f32 %v737_v35, %v686_v42  ;;  %v631_v51 = vpop.f32.mrf.mxu3 }
 0x159   : > { %v560_v47 = vpop.f32.mrf.mxu2 }
 0x15a   : > { %760 = vst.msk [vmem:[%s1184_s5 + $0x18] sm:$0xff] %vm756_vm9, %v738_v45  ;;  %v561_v48 = vadd.f32 %v560_v47, %v501_v44  ;;  %v749_v6 = vpop.f32.mrf.mxu1 }
 0x15b   : > { %v693_v54 = vpop.f32.mrf.mxu0 }
 0x15c   : > { %v626_v49 = vadd.f32 %v625_v41, %v561_v48 }
 0x15e   : > { %v690_v50 = vadd.f32 %v689_v43, %v626_v49 }
 0x160   : > { %v742_v53 = vadd.f32 %v741_v46, %v690_v50  ;;  %v637_v1 = vpop.f32.mrf.mxu3 }
 0x161   : > { %v565_v55 = vpop.f32.mrf.mxu2 }
 0x162   : > { %761 = vst.msk [vmem:[%s1184_s5 + $0x20] sm:$0xff] %vm756_vm9, %v742_v53  ;;  %v566_v57 = vadd.f32 %v565_v55, %v505_v52  ;;  %v753_v15 = vpop.f32.mrf.mxu1 }
 0x163   : > { %v697_v59 = vpop.f32.mrf.mxu0 }
 0x164   : > { %v632_v56 = vadd.f32 %v631_v51, %v566_v57 }
 0x166   : > { %v694_v60 = vadd.f32 %v693_v54, %v632_v56 }
 0x168   : > { %v746_v62 = vadd.f32 %v745_v58, %v694_v60  ;;  %v643_v63 = vpop.f32.mrf.mxu3 }
 0x169   : > { %v570_v2 = vpop.f32.mrf.mxu2 }
 0x16a   : > { %762 = vst.msk [vmem:[%s1184_s5 + $0x28] sm:$0xff] %vm756_vm9, %v746_v62  ;;  %v571_v4 = vadd.f32 %v570_v2, %v509_v61 }
 0x16b   : > { %v701_v13 = vpop.f32.mrf.mxu0 }
 0x16c   : > { %v638_v0 = vadd.f32 %v637_v1, %v571_v4 }
 0x16e   : > { %v698_v7 = vadd.f32 %v697_v59, %v638_v0 }
 0x170   : > { %v750_v10 = vadd.f32 %v749_v6, %v698_v7 }
 0x171   : > { %v575_v11 = vpop.f32.mrf.mxu2 }
 0x172   : > { %763 = vst.msk [vmem:[%s1184_s5 + $0x30] sm:$0xff] %vm756_vm9, %v750_v10  ;;  %v576_v12 = vadd.f32 %v575_v11, %v513_v9 }
 0x174   : > { %v644_v3 = vadd.f32 %v643_v63, %v576_v12 }
 0x176   : > { %v702_v14 = vadd.f32 %v701_v13, %v644_v3 }
 0x178   : > { %v754_v16 = vadd.f32 %v753_v15, %v702_v14 }
 0x17a   : > { %764 = vst.msk [vmem:[%s1184_s5 + $0x38] sm:$0xff] %vm756_vm9, %v754_v16 }
 0x17b PF: > { %s13_s14 = sadd.s32 1, %s970_s14   ;;  %s1220_s12 = smov %s966_s13 }
 0x17c   : > { %p10_p5 = scmp.ge.s32.totalorder %s13_s14, 4   ;;  %s1221_s13 = smov %s1223_s15 }
 0x17e   :  { %12 = sbr.rel (!%p10_p5) target bundleno = 2 (0x2), region = 65 }

</bundles_post_ra>
